<compile_context>
chip_gen: v6e
topology: v6e:2x2x1
jax: 0.10.0
libtpu: 0.0.40
codegen_flags: <defaults>
</compile_context>

<pallas_src>
import jax
import jax.numpy as jnp
from jax.experimental import pallas as pl
from jax.experimental.pallas import tpu as pltpu


def casrel_fused_kernel(enc_ref, h2t_ref, sl_ref, w_ref, b_ref, out_ref):
    TB, S, H = enc_ref.shape
    Npad = w_ref.shape[1]

    enc = enc_ref[...]                                   # [TB, S, H]  f32
    h2t = h2t_ref[...]                                   # [TB, S, 1]  f32 (0/1 span)

    # Subject vector = masked mean over the span: VPU multiply + sublane reduce
    # (keeps the MXU free), scaled by 1/len via pl.reciprocal.
    inv_len = pl.reciprocal(sl_ref[...][:, :, 0], approx=False)     # [TB, 1]
    sub = jnp.sum(enc * h2t, axis=1) * inv_len                      # [TB, H]

    # One lane-dense MXU matmul for all four heads (bf16 in, f32 accumulate).
    w_bf = w_ref[...].astype(jnp.bfloat16)                          # [H, Npad]
    base = jnp.dot(
        enc.reshape(TB * S, H).astype(jnp.bfloat16), w_bf,
        preferred_element_type=jnp.float32).reshape(TB, S, Npad)

    # Rank-1 subject correction: (sub + enc) @ W_obj = enc @ W_obj + sub @ W_obj.
    # Only the object-head / object-tail columns (index >= 2) receive it.
    corr = jnp.dot(sub.astype(jnp.bfloat16), w_bf,
                   preferred_element_type=jnp.float32)              # [TB, Npad]
    col = jax.lax.broadcasted_iota(jnp.int32, (1, Npad), 1)
    corr = jnp.where(col >= 2, corr, 0.0)

    logits = base + b_ref[...] + corr[:, None, :]                   # [TB, S, Npad]
    out_ref[...] = jax.nn.sigmoid(logits)


def _round_up(x, m):
    return ((x + m - 1) // m) * m


def casrel_forward(token_ids, mask, head2tails, sub_lens, params,
                   *, target_rows=1024, vmem_budget_bytes=24 << 20):
    """CasRel forward. Returns the same dict of outputs as the PyTorch module."""
    B, S = token_ids.shape
    H = params["emb"].shape[1]
    R = params["woh"].shape[1]
    C = 2 + 2 * R                       # [sub_head | sub_tail | obj_heads | obj_tails]
    Npad = _round_up(C, 128)            # lane-dense fused output width

    # ---- glue: "BERT" encoder ------------------------------------------------
    # TODO(synk): the pretrained BertModel encoder has no clean single-kernel
    # Pallas equivalent; replaced by a deterministic token-embedding lookup.
    # In the real model, encoded_text is the BERT output living in HBM anyway.
    enc = params["emb"][token_ids].astype(jnp.float32)              # [B, S, H]

    # ---- fused head weights / bias ------------------------------------------
    w_all = jnp.concatenate([params["wsh"], params["wst"],
                             params["woh"], params["wot"]], axis=1)  # [H, C]
    b_all = jnp.concatenate([params["bsh"], params["bst"],
                             params["boh"], params["bot"]], axis=1)  # [1, C]
    w_all = jnp.pad(w_all, ((0, 0), (0, Npad - C))).astype(jnp.float32)
    b_all = jnp.pad(b_all, ((0, 0), (0, Npad - C))).astype(jnp.float32)

    h2t = head2tails.astype(jnp.float32).reshape(B, S, 1)            # [B, S, 1]
    sl = sub_lens.astype(jnp.float32).reshape(B, 1, 1)               # [B, 1, 1]

    # ---- batch tiling: amortize per-grid-step overhead, fill the MXU M dim ---
    # Budget against double-buffered in/out blocks; the conservative default
    # also fits v7x's smaller (64 MiB physical / 32 MiB scoped) VMEM without
    # raising vmem_limit_bytes.
    per_row_bytes = 2 * 4 * (S * H + S + 1 + S * Npad)
    tb = max(1, min(B,
                    max(1, target_rows // max(S, 1)),
                    max(1, vmem_budget_bytes // max(per_row_bytes, 1))))
    Bp = _round_up(B, tb)
    if Bp != B:
        pad = Bp - B
        enc = jnp.pad(enc, ((0, pad), (0, 0), (0, 0)))
        h2t = jnp.pad(h2t, ((0, pad), (0, 0), (0, 0)))
        sl = jnp.pad(sl, ((0, pad), (0, 0), (0, 0)), constant_values=1.0)

    fused = pl.pallas_call(
        casrel_fused_kernel,
        out_shape=jax.ShapeDtypeStruct((Bp, S, Npad), jnp.float32),
        grid_spec=pltpu.PrefetchScalarGridSpec(
            num_scalar_prefetch=0,
            grid=(Bp // tb,),
            in_specs=[
                pl.BlockSpec((tb, S, H), lambda b: (b, 0, 0)),   # encoded_text
                pl.BlockSpec((tb, S, 1), lambda b: (b, 0, 0)),   # head2tails
                pl.BlockSpec((tb, 1, 1), lambda b: (b, 0, 0)),   # sub_lens
                pl.BlockSpec((H, Npad), lambda b: (0, 0)),       # fused W
                pl.BlockSpec((1, Npad), lambda b: (0, 0)),       # fused bias
            ],
            out_specs=pl.BlockSpec((tb, S, Npad), lambda b: (b, 0, 0)),
        ),
        compiler_params=pltpu.CompilerParams(
            dimension_semantics=("parallel",)),
    )(enc, h2t, sl, w_all, b_all)

    fused = fused[:B]
    return {
        "pred_sub_heads": fused[:, :, 0:1],
        "pred_sub_tails": fused[:, :, 1:2],
        "pred_obj_heads": fused[:, :, 2:2 + R],
        "pred_obj_tails": fused[:, :, 2 + R:2 + 2 * R],
        "mask": mask,
    }


def casrel_reference(token_ids, mask, head2tails, sub_lens, params):
    """Pure-JAX reference mirroring the PyTorch forward (for correctness check)."""
    enc = params["emb"][token_ids].astype(jnp.float32)               # [B, S, H]
    sh = jax.nn.sigmoid(enc @ params["wsh"] + params["bsh"][0])
    st = jax.nn.sigmoid(enc @ params["wst"] + params["bst"][0])
    h2t = head2tails.astype(jnp.float32)[:, None, :]                 # [B, 1, S]
    sub = jnp.matmul(h2t, enc)                                       # [B, 1, H]
    sub = sub / sub_lens.astype(jnp.float32)[:, None, :]             # [B, 1, 1]
    enc2 = sub + enc
    oh = jax.nn.sigmoid(enc2 @ params["woh"] + params["boh"][0])
    ot = jax.nn.sigmoid(enc2 @ params["wot"] + params["bot"][0])
    return sh, st, oh, ot


def init_params(key, vocab, hidden, num_relations):
    """Deterministic synthetic parameters (nn.Linear weights stored as [in, out])."""
    ks = jax.random.split(key, 9)
    scale = 0.05
    return {
        "emb": jax.random.normal(ks[0], (vocab, hidden), jnp.float32) * scale,
        "wsh": jax.random.normal(ks[1], (hidden, 1), jnp.float32) * scale,
        "bsh": jax.random.normal(ks[2], (1, 1), jnp.float32) * scale,
        "wst": jax.random.normal(ks[3], (hidden, 1), jnp.float32) * scale,
        "bst": jax.random.normal(ks[4], (1, 1), jnp.float32) * scale,
        "woh": jax.random.normal(ks[5], (hidden, num_relations), jnp.float32) * scale,
        "boh": jax.random.normal(ks[6], (1, num_relations), jnp.float32) * scale,
        "wot": jax.random.normal(ks[7], (hidden, num_relations), jnp.float32) * scale,
        "bot": jax.random.normal(ks[8], (1, num_relations), jnp.float32) * scale,
    }


if __name__ == "__main__":
    B, S, H, R, VOCAB = 2, 8, 32, 4, 50

    key = jax.random.PRNGKey(0)
    k_tok, k_h2t, k_par = jax.random.split(key, 3)

    token_ids = jax.random.randint(k_tok, (B, S), 0, VOCAB, dtype=jnp.int32)
    mask = jnp.ones((B, S), dtype=jnp.float32)

    # binary subject-span indicator per batch, and its length (>= 1)
    span = jax.random.bernoulli(k_h2t, 0.4, (B, S)).astype(jnp.float32)
    span = span.at[:, 0].set(1.0)                      # ensure non-empty span
    head2tails = span
    sub_lens = jnp.sum(span, axis=-1, keepdims=True)   # [B, 1]

    params = init_params(k_par, VOCAB, H, R)

    out = casrel_forward(token_ids, mask, head2tails, sub_lens, params)
    jax.block_until_ready(out)

    # correctness check vs pure-JAX (f32) reference; kernel matmuls are bf16-in
    # f32-accumulate, so allow a small tolerance on the sigmoid outputs.
    ref_sh, ref_st, ref_oh, ref_ot = casrel_reference(
        token_ids, mask, head2tails, sub_lens, params)
    assert jnp.allclose(out["pred_sub_heads"], ref_sh, atol=5e-3)
    assert jnp.allclose(out["pred_sub_tails"], ref_st, atol=5e-3)
    assert jnp.allclose(out["pred_obj_heads"], ref_oh, atol=5e-3)
    assert jnp.allclose(out["pred_obj_tails"], ref_ot, atol=5e-3)
    assert out["pred_sub_heads"].shape == (B, S, 1)
    assert out["pred_sub_tails"].shape == (B, S, 1)
    assert out["pred_obj_heads"].shape == (B, S, R)
    assert out["pred_obj_tails"].shape == (B, S, R)

    print("KERNEL_OK")
</pallas_src>

<mosaic_0001>
module attributes {stable_mosaic.version = 11 : i64} {
  func.func @casrel_fused_kernel(%arg0: i32, %arg1: memref<2x8x32xf32, #tpu.memory_space<vmem>>, %arg2: memref<2x8x1xf32, #tpu.memory_space<vmem>>, %arg3: memref<2x1x1xf32, #tpu.memory_space<vmem>>, %arg4: memref<32x128xf32, #tpu.memory_space<vmem>>, %arg5: memref<1x128xf32, #tpu.memory_space<vmem>>, %arg6: memref<2x8x128xf32, #tpu.memory_space<vmem>>) attributes {dimension_semantics = [#tpu.dimension_semantics<parallel>], iteration_bounds = array<i64: 1>, scalar_prefetch = 0 : i64, scratch_operands = 0 : i64, tpu.core_type = #tpu.core_type<tc>, window_params = [{transform_indices = @transform_0, window_bounds = array<i64: 2, 8, 32>}, {transform_indices = @transform_1, window_bounds = array<i64: 2, 8, 1>}, {transform_indices = @transform_2, window_bounds = array<i64: 2, 1, 1>}, {pipeline_mode = #tpu.pipeline_mode<synchronous>, transform_indices = @transform_3, window_bounds = array<i64: 32, 128>}, {pipeline_mode = #tpu.pipeline_mode<synchronous>, transform_indices = @transform_4, window_bounds = array<i64: 1, 128>}, {transform_indices = @transform_5, window_bounds = array<i64: 2, 8, 128>}]} {
    %c0 = arith.constant 0 : index
    %c0_0 = arith.constant 0 : index
    %c0_1 = arith.constant 0 : index
    %0 = vector.load %arg1[%c0, %c0_0, %c0_1] : memref<2x8x32xf32, #tpu.memory_space<vmem>>, vector<2x8x32xf32>
    %c0_2 = arith.constant 0 : index
    %c0_3 = arith.constant 0 : index
    %c0_4 = arith.constant 0 : index
    %1 = vector.load %arg2[%c0_2, %c0_3, %c0_4] : memref<2x8x1xf32, #tpu.memory_space<vmem>>, vector<2x8x1xf32>
    %c0_5 = arith.constant 0 : index
    %c0_6 = arith.constant 0 : index
    %c0_7 = arith.constant 0 : index
    %2 = vector.load %arg3[%c0_5, %c0_6, %c0_7] : memref<2x1x1xf32, #tpu.memory_space<vmem>>, vector<2x1x1xf32>
    %3 = vector.shape_cast %2 : vector<2x1x1xf32> to vector<2x1xf32>
    %4 = tpu.reciprocal %3 : vector<2x1xf32> -> vector<2x1xf32>
    %5 = vector.broadcast %1 : vector<2x8x1xf32> to vector<2x8x32xf32>
    %6 = arith.mulf %0, %5 : vector<2x8x32xf32>
    %cst = arith.constant dense<0.000000e+00> : vector<2x32xf32>
    %7 = vector.multi_reduction <add>, %6, %cst [1] : vector<2x8x32xf32> to vector<2x32xf32>
    %8 = vector.broadcast %4 : vector<2x1xf32> to vector<2x32xf32>
    %9 = arith.mulf %7, %8 : vector<2x32xf32>
    %c0_8 = arith.constant 0 : index
    %c0_9 = arith.constant 0 : index
    %10 = vector.load %arg4[%c0_8, %c0_9] : memref<32x128xf32, #tpu.memory_space<vmem>>, vector<32x128xf32>
    %11 = arith.truncf %10 : vector<32x128xf32> to vector<32x128xbf16>
    %12 = vector.shape_cast %0 : vector<2x8x32xf32> to vector<16x32xf32>
    %13 = arith.truncf %12 : vector<16x32xf32> to vector<16x32xbf16>
    %cst_10 = arith.constant dense<0.000000e+00> : vector<16x128xf32>
    %14 = tpu.matmul %13, %11, %cst_10 {dimension_numbers = #tpu.dot_dimension_numbers<[1], [0], [0], [1], [0, 0, 1, 1], [], []>} : vector<16x32xbf16>, vector<32x128xbf16>, vector<16x128xf32> -> vector<16x128xf32>
    %15 = vector.shape_cast %14 : vector<16x128xf32> to vector<2x8x128xf32>
    %16 = arith.truncf %9 : vector<2x32xf32> to vector<2x32xbf16>
    %cst_11 = arith.constant dense<0.000000e+00> : vector<2x128xf32>
    %17 = tpu.matmul %16, %11, %cst_11 {dimension_numbers = #tpu.dot_dimension_numbers<[1], [0], [0], [1], [0, 0, 1, 1], [], []>} : vector<2x32xbf16>, vector<32x128xbf16>, vector<2x128xf32> -> vector<2x128xf32>
    %18 = tpu.iota {dimensions = array<i32: 1>} : vector<1x128xi32>
    %c2_i32 = arith.constant 2 : i32
    %19 = vector.broadcast %c2_i32 : i32 to vector<1x128xi32>
    %20 = arith.cmpi sge, %18, %19 : vector<1x128xi32>
    %cst_12 = arith.constant 0.000000e+00 : f32
    %21 = vector.shape_cast %20 : vector<1x128xi1> to vector<1x128xi1>
    %22 = vector.broadcast %21 : vector<1x128xi1> to vector<2x128xi1>
    %23 = vector.broadcast %cst_12 : f32 to vector<2x128xf32>
    %24 = arith.select %22, %17, %23 : vector<2x128xi1>, vector<2x128xf32>
    %c0_13 = arith.constant 0 : index
    %c0_14 = arith.constant 0 : index
    %25 = vector.load %arg5[%c0_13, %c0_14] : memref<1x128xf32, #tpu.memory_space<vmem>>, vector<1x128xf32>
    %26 = vector.shape_cast %25 : vector<1x128xf32> to vector<1x1x128xf32>
    %27 = vector.broadcast %26 : vector<1x1x128xf32> to vector<2x8x128xf32>
    %28 = arith.addf %15, %27 : vector<2x8x128xf32>
    %29 = vector.shape_cast %24 : vector<2x128xf32> to vector<2x1x128xf32>
    %30 = vector.broadcast %29 : vector<2x1x128xf32> to vector<2x8x128xf32>
    %31 = arith.addf %28, %30 : vector<2x8x128xf32>
    %32 = arith.negf %31 : vector<2x8x128xf32>
    %33 = math.exp %32 : vector<2x8x128xf32>
    %cst_15 = arith.constant 1.000000e+00 : f32
    %34 = vector.broadcast %cst_15 : f32 to vector<2x8x128xf32>
    %35 = arith.addf %34, %33 : vector<2x8x128xf32>
    %36 = arith.divf %34, %35 : vector<2x8x128xf32>
    %c0_16 = arith.constant 0 : index
    %c0_17 = arith.constant 0 : index
    %c0_18 = arith.constant 0 : index
    %37 = vector.load %arg6[%c0_16, %c0_17, %c0_18] : memref<2x8x128xf32, #tpu.memory_space<vmem>>, vector<2x8x128xf32>
    tpu.vector_store %arg6[%c0_16, %c0_17, %c0_18], %36 {strides = array<i32>} : memref<2x8x128xf32, #tpu.memory_space<vmem>>, vector<2x8x128xf32>,
    return
  }
  func.func @transform_0(%arg0: i32) -> (i32, i32, i32) {
    %c0_i32 = arith.constant 0 : i32
    %c0_i32_0 = arith.constant 0 : i32
    %c0_i32_1 = arith.constant 0 : i32
    return %arg0, %c0_i32, %c0_i32_0 : i32, i32, i32
  }
  func.func @transform_1(%arg0: i32) -> (i32, i32, i32) {
    %c0_i32 = arith.constant 0 : i32
    %c0_i32_0 = arith.constant 0 : i32
    %c0_i32_1 = arith.constant 0 : i32
    return %arg0, %c0_i32, %c0_i32_0 : i32, i32, i32
  }
  func.func @transform_2(%arg0: i32) -> (i32, i32, i32) {
    %c0_i32 = arith.constant 0 : i32
    %c0_i32_0 = arith.constant 0 : i32
    %c0_i32_1 = arith.constant 0 : i32
    return %arg0, %c0_i32, %c0_i32_0 : i32, i32, i32
  }
  func.func @transform_3(%arg0: i32) -> (i32, i32) {
    %c0_i32 = arith.constant 0 : i32
    %c0_i32_0 = arith.constant 0 : i32
    %c0_i32_1 = arith.constant 0 : i32
    return %c0_i32, %c0_i32_0 : i32, i32
  }
  func.func @transform_4(%arg0: i32) -> (i32, i32) {
    %c0_i32 = arith.constant 0 : i32
    %c0_i32_0 = arith.constant 0 : i32
    %c0_i32_1 = arith.constant 0 : i32
    return %c0_i32, %c0_i32_0 : i32, i32
  }
  func.func @transform_5(%arg0: i32) -> (i32, i32, i32) {
    %c0_i32 = arith.constant 0 : i32
    %c0_i32_0 = arith.constant 0 : i32
    %c0_i32_1 = arith.constant 0 : i32
    return %arg0, %c0_i32, %c0_i32_0 : i32, i32, i32
  }
}

</mosaic_0001>

<bundles_post_ra>
// kernel: tpu_custom_call.1
= control target key start
LH: loop header
LB: loop body
LE: loop exit
PB: predicated region body
PF: predicated region fallthrough
CT: control target
= control target key end

     0   :  { %10 = vsyncpa [#allocation3], 0  ;;  %s444_s0 = inlined_call_operand.vmem [shape: f32[2,8,32], index: 0, kind: input, shape index: {}]   ;;  %s445_s1 = inlined_call_operand.vmem [shape: f32[2,8,1], index: 1, kind: input, shape index: {}]   ;;  %s446_s2 = inlined_call_operand.vmem [shape: f32[2,1,1], index: 2, kind: input, shape index: {}]   ;;  %s447_s3 = inlined_call_operand.hbm [shape: f32[32,128], index: 3, kind: input, shape index: {}]   ;;  %s448_s4 = inlined_call_operand.vmem [shape: f32[1,128], index: 4, kind: input, shape index: {}]   ;;  %s449_s5 = inlined_call_operand.hbm [shape: f32[2,8,128], index: 5, kind: output, shape index: {}]  }
   0x1   :  { %11 = vsyncpa [#allocation4], 0  ;;  %s369_s18 = smov [#allocation2]  }
   0x2   :  { %s23_s19 = sshll.u32 %s369_s18, 4  ;;  %s24_s19 = int_to_ptr.vmem [resolvable:$true] %s23_s19 }
   0x3   :  { %s333_s20 = scalar_lea.vmem %s24_s19, 512  ;;  %p338_p1 = scmp.lt.s32.totalorder %s24_s19, %s24_s19 }
   0x4   :  { %p334_p0 = scmp.ne.s32.totalorder %s24_s19, %s333_s20  ;;  %p339_p2 = scmp.lt.s32.totalorder %s333_s20, %s333_s20 }
   0x6   :  { %p340_p3 = por %p339_p2, %p338_p1 }
   0x8   :  { %p341_p4 = pnand %p340_p3, %p334_p0 }
   0xa   :  { %344 = shalt.err (!%p341_p4)
}
   0xb   :  { %s370_s21 = smov 128   ;;  %s371_s22 = smov 8  }
   0xc   :  { %29 = dma.hbm_to_vmem [thread:$0]  %s447_s3, 512, %s24_s19, [#allocation3], %s370_s21, %s370_s21, %s371_s22  }
   0xd   :  { %365 = dma.done.wait [#allocation3], 512  }
   0xe   :  { %366 = vsyncadd [#allocation3], 4294966784  ;;  %v372_v0 = vmov 0   ;;  %v39_v1 = vld [vmem:[%s445_s1 + $0x8] sm:$0xff]  ;;  %v41_v2 = vld [vmem:[%s446_s2 + $0x1] sm:$0x1]  ;;  %v76_v20 = vlaneseq }
   0xf   :  { %311 = vset.pattern.permute.xlu0 %v372_v0  ;;  %312 = vset.pattern.permute.xlu1 %v372_v0  ;;  %313 = vrcp.f32 %v41_v2  ;;  %v40_v3 = vld [vmem:[%s446_s2] sm:$0x1]  ;;  %v93_v5 = vld [vmem:[#allocation2 + $0x10] sm:$0xff]  ;;  %v94_v6 = vld [vmem:[#allocation2 + $0x18] sm:$0xff]  ;;  %v373_v9 = vmov 0.0   ;;  %vm56_vm0 = vcmask 261120  }
  0x10   :  { %51 = vperm.xlu0 %311, %v39_v1   ;;  %v38_v4 = vld [vmem:[%s445_s1] sm:$0xff]  ;;  %315 = vrcp.f32 %v40_v3  ;;  %v96_v8 = vpack.c.bf16 %v94_v6, %v93_v5  ;;  %287 = vmatprep.subr.bf16.mxu0 %v373_v9  ;;  %v92_v12 = vld [vmem:[#allocation2 + $0x8] sm:$0xff]  ;;  %vm374_vm1 = vmmov 0   ;;  %v77_v26 = vshrl.u32 %v76_v20, 7 }
  0x11   :  { %295 = vmatprep.subr.bf16.mxu1 %v373_v9  ;;  %v91_v11 = vld [vmem:[#allocation2] sm:$0xff]  ;;  %v37_v13 = vld [vmem:[%s444_s0 + $0x8] sm:$0xff]  ;;  %291 = vmatprep.mubr.msk.bf16.mxu0 %vm374_vm1, %v373_v9  ;;  %vm149_vm2 = vcmask 1041409   ;;  %v375_v55 = vmov 1966171168   ;;  %v196_v57 = vand.u32 127, %v76_v20 }
  0x12   :  { %288 = vmatpush3.bf16.msra.mxu0 %v96_v8  ;;  %296 = vmatpush3.bf16.msra.mxu1 %v96_v8  ;;  %v36_v14 = vld [vmem:[%s444_s0] sm:$0xff]  ;;  %v95_v15 = vpack.c.bf16 %v92_v12, %v91_v11  ;;  %v78_v31 = vsub.s32 0, %v77_v26  ;;  %v212_v56 = vunpack.c.l.s4 %v375_v55 }
  0x13   :  { %289 = vmatprep.subr.bf16.mxu0 %v373_v9  ;;  %297 = vmatprep.subr.bf16.mxu1 %v373_v9  ;;  %v97_v16 = vpack.c.bf16 %v37_v13, %v36_v14  ;;  %vm197_vm3 = vcmp.ge.s32.totalorder %v196_v57, 2  ;;  %v278_v0 = vld [vmem:[%s448_s4] ss:$0 sm:$0xff]  ;;  %s376_s4 = smov [#allocation5]  }
  0x14   :  { %46 = vperm.xlu0 %311, %v38_v4   ;;  %299 = vmatprep.mubr.msk.bf16.mxu1 %vm374_vm1, %v373_v9  ;;  %v213_v58 = vunpack.c.0.s8 %v212_v56  ;;  %s264_s10 = sshll.u32 %s376_s4, 4  ;;  %s265_s10 = int_to_ptr.vmem [resolvable:$true] %s264_s10 }
  0x15   :  { %s345_s11 = scalar_lea.vmem %s265_s10, 256  ;;  %p350_p6 = scmp.lt.s32.totalorder %s265_s10, %s265_s10 }
  0x16   :  { %290 = vmatpush3.bf16.msra.mxu0 %v95_v15  ;;  %298 = vmatpush3.bf16.msra.mxu1 %v95_v15  ;;  %v216_v59 = vsub.s32 %v213_v58, %v77_v26  ;;  %p346_p5 = scmp.ne.s32.totalorder %s265_s10, %s345_s11  ;;  %p351_p7 = scmp.lt.s32.totalorder %s345_s11, %s345_s11 }
  0x18   :  { %p352_p8 = por %p351_p7, %p350_p6 }
  0x19   :  { %292 = vmatmul.mubr.msk.bf16.vlgmr.msra.gmra.mxu0 %vm56_vm0, %v97_v16 }
  0x1a   :  { %p353_p9 = pnand %p352_p8, %p346_p5 }
  0x1c   :  { %v314_v7 = vpop.eup %313 }
  0x1d   :  { %82 = vperm.xlu1 %312, %v314_v7   ;;  %v316_v10 = vpop.eup %315 }
  0x21   :  { %73 = vperm.xlu1 %312, %v316_v10  }
  0x8b   :  { %v52_v17 = vpop.permute.xlu0 %51 }
  0x8c   :  { %v55_v18 = vmul.f32 %v52_v17, %v37_v13 }
  0x8e   :  { %v64_v19 = vsel %vm56_vm0, %v55_v18, 0.0 }
  0x8f   :  { %v65_v21 = vrot.slane %v64_v19, 4  ;;  %v47_v22 = vpop.permute.xlu0 %46 }
  0x90   :  { %v54_v23 = vmul.f32 %v47_v22, %v36_v14 }
  0x91   :  { %v66_v24 = vadd.f32 %v65_v21, %v64_v19 }
  0x92   :  { %v57_v25 = vsel %vm56_vm0, %v54_v23, 0.0 }
  0x93   :  { %v67_v27 = vrot.slane %v66_v24, 2  ;;  %v58_v28 = vrot.slane %v57_v25, 4 }
  0x95   :  { %v68_v29 = vadd.f32 %v67_v27, %v66_v24  ;;  %v59_v30 = vadd.f32 %v58_v28, %v57_v25 }
  0x97   :  { %v60_v32 = vrot.slane %v59_v30, 2  ;;  %v69_v33 = vrot.slane %v68_v29, 1 }
  0x98   :  { %v83_v35 = vpop.permute.xlu1 %82 }
  0x99   :  { %v61_v34 = vadd.f32 %v60_v32, %v59_v30  ;;  %v70_v36 = vadd.f32 %v69_v33, %v68_v29  ;;  %v88_v37 = vrot.slane %v83_v35, %v78_v31 }
  0x9b   :  { %v62_v38 = vrot.slane %v61_v34, 1  ;;  %v90_v39 = vmul.f32 %v88_v37, %v70_v36 }
  0x9c   :  { %v74_v40 = vpop.permute.xlu1 %73 }
  0x9d   :  { %v63_v41 = vadd.f32 %v62_v38, %v61_v34  ;;  %v143_v42 = vpack.c.bf16 %v90_v39, %v90_v39  ;;  %v79_v43 = vrot.slane %v74_v40, %v78_v31 }
  0x9f   :  { %v147_v44 = vunpack.c.l.b16 %v143_v42  ;;  %v89_v45 = vmul.f32 %v79_v43, %v63_v41 }
  0xa1   :  { %v142_v46 = vpack.c.bf16 %v89_v45, %v89_v45  ;;  %v148_v47 = vrot.slane %v147_v44, 7 }
  0xa3   :  { %v146_v48 = vunpack.c.l.b16 %v142_v46 }
  0xa5   :  { %v150_v49 = vsel %vm149_vm2, %v148_v47, %v146_v48 }
  0xa6   :  { %v151_v50 = vpack.c.b16 %v150_v49, %v150_v49 }
  0xa8   :  { %300 = vmatmul.mubr.msk.bf16.vlgmr.msra.gmra.mxu1 %vm56_vm0, %v151_v50 }
  0xd9   :  { %v135_v51 = vpop.f32.mrf.mxu0 }
  0xda   :  { %v208_v4 = vadd.f32 %v278_v0, %v135_v51 }
  0xdb   :  { %v293_v52 = vpop.f32.mrf.mxu0 }
  0xdd   :  { %v138_v53 = vpop.f32.mrf.mxu0 }
  0xde   :  { %v209_v9 = vadd.f32 %v278_v0, %v138_v53 }
  0xdf   :  { %v294_v54 = vpop.f32.mrf.mxu0 }
 0x168   :  { %v189_v60 = vpop.f32.mrf.mxu1 }
 0x169   :  { %v200_v61 = vsel %vm197_vm3, %v189_v60, 0.0 }
 0x16a   :  { %v217_v62 = vrot.slane %v200_v61, %v216_v59  ;;  %v301_v63 = vpop.f32.mrf.mxu1 }
 0x16c   :  { %v218_v1 = vcombine.high %v217_v62, %v217_v62  ;;  %v225_v2 = vrot.slane %v217_v62, %v216_v59  ;;  %v192_v3 = vpop.f32.mrf.mxu1 }
 0x16e   :  { %v232_v5 = vrot.slane %v218_v1, %v216_v59  ;;  %v236_v6 = vrot.slane %v225_v2, %v78_v31  ;;  %v302_v7 = vpop.f32.mrf.mxu1 }
 0x170   :  { %v243_v8 = vadd.f32 %v236_v6, %v208_v4  ;;  %v240_v10 = vrot.slane %v232_v5, %v78_v31 }
 0x172   :  { %v279_v11 = vmul.f32 -1.442695, %v243_v8  ;;  %v244_v12 = vadd.f32 %v240_v10, %v209_v9 }
 0x174   :  { %317 = vpow2.f32 %v279_v11  ;;  %v280_v13 = vmul.f32 -1.442695, %v244_v12 }
 0x176   :  { %319 = vpow2.f32 %v280_v13 }
 0x181   :  { %v318_v14 = vpop.eup %317 }
 0x182   :  { %v251_v15 = vadd.f32 1.0, %v318_v14 }
 0x183   :  { %v320_v16 = vpop.eup %319 }
 0x184   :  { %321 = vrcp.f32 %v251_v15  ;;  %v252_v17 = vadd.f32 1.0, %v320_v16 }
 0x186   :  { %323 = vrcp.f32 %v252_v17 }
 0x191   :  { %v322_v18 = vpop.eup %321 }
 0x192   :  { %257 = vst [vmem:[#allocation5] sm:$0xff] %v322_v18 }
 0x193   :  { %v324_v19 = vpop.eup %323 }
 0x194   :  { %258 = vst [vmem:[#allocation5 + $0x8] sm:$0xff] %v324_v19 }
 0x195   :  { %356 = shalt.err (!%p353_p9)
}
 0x196   :  { %270 = dma.vmem_to_hbm [thread:$0]  %s265_s10, 256, %s449_s5, [#allocation4], %s370_s21, %s370_s21, %s371_s22  }
 0x197   :  { %367 = dma.done.wait [#allocation4], 256  }
 0x198   :  { %368 = vsyncadd [#allocation4], 4294967040 }
 0x199   :  { %274 = vsyncpa [#allocation3], 1 }
 0x19a   :  { %275 = vsyncpa [#allocation4], 1 }

</bundles_post_ra>
